<compile_context>
chip_gen: v7x
topology: tpu7x:2x2x1
jax: 0.10.0
libtpu: 0.0.40
codegen_flags: <defaults>
</compile_context>

<pallas_src>
import jax
import jax.numpy as jnp
from jax.experimental import pallas as pl
from jax.experimental.pallas import tpu as pltpu  # noqa: F401  (TPU backend)


def _transpose2d_kernel(x_ref, o_ref):
    # x_ref: (H*W, C), o_ref: (C, H*W). Single full-tile 2D transpose.
    o_ref[...] = x_ref[...].T


def permute_201(x: jax.Array) -> jax.Array:
    """Equivalent of torch.permute(x, (2, 0, 1)) for a 3D array."""
    H, W, C = x.shape
    HW = H * W

    # Free metadata reshape: (H, W, C) -> (H*W, C).
    x2d = jnp.reshape(x, (HW, C))

    out2d = pl.pallas_call(
        _transpose2d_kernel,
        out_shape=jax.ShapeDtypeStruct((C, HW), x.dtype),
        # Full-array blocks (block_shape == array shape): no (8,128)
        # divisibility requirement, no grid, single invocation.
        in_specs=[pl.BlockSpec((HW, C), lambda: (0, 0))],
        out_specs=pl.BlockSpec((C, HW), lambda: (0, 0)),
    )(x2d)

    # Free metadata reshape back to the permuted logical shape (C, H, W).
    return jnp.reshape(out2d, (C, H, W))


if __name__ == "__main__":
    key = jax.random.PRNGKey(0)
    # Same shape as the reference module: torch.randn([49, 49, 32])
    x538 = jax.random.normal(key, (49, 49, 32), dtype=jnp.float32)

    x539 = permute_201(x538)
    jax.block_until_ready(x539)

    # Correctness check against plain JAX transpose (same semantics as
    # torch.permute(2, 0, 1)).
    ref = jnp.transpose(x538, (2, 0, 1))
    assert x539.shape == (32, 49, 49), x539.shape
    assert x539.dtype == x538.dtype
    assert jnp.array_equal(x539, ref)

    print("KERNEL_OK")
</pallas_src>

<mosaic_0001>
module attributes {stable_mosaic.version = 11 : i64} {
  func.func @_transpose2d_kernel(%arg0: memref<2401x32xf32, #tpu.memory_space<vmem>>, %arg1: memref<32x2401xf32, #tpu.memory_space<vmem>>) attributes {dimension_semantics = [], scalar_prefetch = 0 : i64, scratch_operands = 0 : i64, tpu.core_type = #tpu.core_type<tc>} {
    %c0 = arith.constant 0 : index
    %c0_0 = arith.constant 0 : index
    %0 = vector.load %arg0[%c0, %c0_0] : memref<2401x32xf32, #tpu.memory_space<vmem>>, vector<2401x32xf32>
    %1 = tpu.transpose %0, [1, 0] : vector<2401x32xf32> -> vector<32x2401xf32>
    %c0_1 = arith.constant 0 : index
    %c0_2 = arith.constant 0 : index
    %2 = vector.load %arg1[%c0_1, %c0_2] : memref<32x2401xf32, #tpu.memory_space<vmem>>, vector<32x2401xf32>
    tpu.vector_store %arg1[%c0_1, %c0_2], %1 {strides = array<i32>} : memref<32x2401xf32, #tpu.memory_space<vmem>>, vector<32x2401xf32>,
    return
  }
}

</mosaic_0001>

<bundles_post_ra>
// kernel: tpu_custom_call.1
= control target key start
LH: loop header
LB: loop body
LE: loop exit
PB: predicated region body
PF: predicated region fallthrough
CT: control target
= control target key end

     0   :  { %s1967_s0 = inlined_call_operand.vmem [shape: f32[2401,32], index: 0, kind: input, shape index: {}]   ;;  %s1968_s1 = inlined_call_operand.hbm [shape: f32[32,2401], index: 1, kind: output, shape index: {}]  }
   0x1   :  { %v9_v0 = vld [vmem:[%s1967_s0] sm:$0xff]  ;;  %v10_v1 = vld [vmem:[%s1967_s0 + $0x8] sm:$0xff]  ;;  %v11_v3 = vld [vmem:[%s1967_s0 + $0x10] sm:$0xff] }
   0x2   :  { %310 = vxpose.xlu0.b32.start [1/16] (narrow) %v9_v0, 32  ;;  %v25_v2 = vld [vmem:[%s1967_s0 + $0x80] sm:$0xff]  ;;  %v26_v4 = vld [vmem:[%s1967_s0 + $0x88] sm:$0xff]  ;;  %v12_v5 = vld [vmem:[%s1967_s0 + $0x18] sm:$0xff] }
   0x3   :  { %342 = vxpose.xlu1.b32.start [1/16] (narrow) %v25_v2, 32  ;;  %v27_v6 = vld [vmem:[%s1967_s0 + $0x90] sm:$0xff]  ;;  %v13_v7 = vld [vmem:[%s1967_s0 + $0x20] sm:$0xff]  ;;  %v28_v8 = vld [vmem:[%s1967_s0 + $0x98] sm:$0xff] }
   0x4   :  { %v14_v9 = vld [vmem:[%s1967_s0 + $0x28] sm:$0xff]  ;;  %v29_v10 = vld [vmem:[%s1967_s0 + $0xa0] sm:$0xff] }
   0x6   :  { %311 = vxpose.xlu0.b32.cont [2/16] (narrow) %v10_v1, 32 }
   0x7   :  { %343 = vxpose.xlu1.b32.cont [2/16] (narrow) %v26_v4, 32 }
   0xa   :  { %312 = vxpose.xlu0.b32.cont [3/16] (narrow) %v11_v3, 32 }
   0xb   :  { %344 = vxpose.xlu1.b32.cont [3/16] (narrow) %v27_v6, 32 }
   0xe   :  { %313 = vxpose.xlu0.b32.cont [4/16] (narrow) %v12_v5, 32 }
   0xf   :  { %345 = vxpose.xlu1.b32.cont [4/16] (narrow) %v28_v8, 32 }
  0x12   :  { %314 = vxpose.xlu0.b32.cont [5/16] (narrow) %v13_v7, 32 }
  0x13   :  { %6 = vsyncpa [#allocation3], 0  ;;  %v15_v11 = vld [vmem:[%s1967_s0 + $0x30] sm:$0xff]  ;;  %346 = vxpose.xlu1.b32.cont [5/16] (narrow) %v29_v10, 32  ;;  %v30_v12 = vld [vmem:[%s1967_s0 + $0xa8] sm:$0xff]  ;;  %vm936_vm0 = vcmask 793600  }
  0x14   :  { %v16_v13 = vld [vmem:[%s1967_s0 + $0x38] sm:$0xff]  ;;  %v31_v14 = vld [vmem:[%s1967_s0 + $0xb0] sm:$0xff]  ;;  %v17_v15 = vld [vmem:[%s1967_s0 + $0x40] sm:$0xff] }
  0x15   :  { %v32_v16 = vld [vmem:[%s1967_s0 + $0xb8] sm:$0xff]  ;;  %v18_v17 = vld [vmem:[%s1967_s0 + $0x48] sm:$0xff]  ;;  %v33_v18 = vld [vmem:[%s1967_s0 + $0xc0] sm:$0xff] }
  0x16   :  { %315 = vxpose.xlu0.b32.cont [6/16] (narrow) %v14_v9, 32  ;;  %v19_v19 = vld [vmem:[%s1967_s0 + $0x50] sm:$0xff]  ;;  %v34_v20 = vld [vmem:[%s1967_s0 + $0xc8] sm:$0xff]  ;;  %v20_v21 = vld [vmem:[%s1967_s0 + $0x58] sm:$0xff] }
  0x17   :  { %347 = vxpose.xlu1.b32.cont [6/16] (narrow) %v30_v12, 32  ;;  %v35_v22 = vld [vmem:[%s1967_s0 + $0xd0] sm:$0xff]  ;;  %v21_v23 = vld [vmem:[%s1967_s0 + $0x60] sm:$0xff]  ;;  %v36_v24 = vld [vmem:[%s1967_s0 + $0xd8] sm:$0xff] }
  0x18   :  { %v22_v25 = vld [vmem:[%s1967_s0 + $0x68] sm:$0xff]  ;;  %v37_v26 = vld [vmem:[%s1967_s0 + $0xe0] sm:$0xff]  ;;  %v23_v27 = vld [vmem:[%s1967_s0 + $0x70] sm:$0xff] }
  0x19   :  { %v38_v28 = vld [vmem:[%s1967_s0 + $0xe8] sm:$0xff]  ;;  %v24_v29 = vld [vmem:[%s1967_s0 + $0x78] sm:$0xff]  ;;  %v39_v30 = vld [vmem:[%s1967_s0 + $0xf0] sm:$0xff] }
  0x1a   :  { %316 = vxpose.xlu0.b32.cont [7/16] (narrow) %v15_v11, 32  ;;  %v41_v31 = vld [vmem:[%s1967_s0 + $0x100] sm:$0xff]  ;;  %v40_v32 = vld [vmem:[%s1967_s0 + $0xf8] sm:$0xff]  ;;  %v42_v33 = vld [vmem:[%s1967_s0 + $0x108] sm:$0xff] }
  0x1b   :  { %348 = vxpose.xlu1.b32.cont [7/16] (narrow) %v31_v14, 32  ;;  %v57_v34 = vld [vmem:[%s1967_s0 + $0x180] sm:$0xff]  ;;  %v43_v35 = vld [vmem:[%s1967_s0 + $0x110] sm:$0xff]  ;;  %v58_v36 = vld [vmem:[%s1967_s0 + $0x188] sm:$0xff] }
  0x1c   :  { %v44_v37 = vld [vmem:[%s1967_s0 + $0x118] sm:$0xff]  ;;  %v59_v38 = vld [vmem:[%s1967_s0 + $0x190] sm:$0xff]  ;;  %v45_v39 = vld [vmem:[%s1967_s0 + $0x120] sm:$0xff] }
  0x1d   :  { %v60_v40 = vld [vmem:[%s1967_s0 + $0x198] sm:$0xff]  ;;  %v46_v41 = vld [vmem:[%s1967_s0 + $0x128] sm:$0xff]  ;;  %v61_v42 = vld [vmem:[%s1967_s0 + $0x1a0] sm:$0xff] }
  0x1e   :  { %317 = vxpose.xlu0.b32.cont [8/16] (narrow) %v16_v13, 32  ;;  %v47_v43 = vld [vmem:[%s1967_s0 + $0x130] sm:$0xff]  ;;  %v62_v44 = vld [vmem:[%s1967_s0 + $0x1a8] sm:$0xff]  ;;  %v48_v45 = vld [vmem:[%s1967_s0 + $0x138] sm:$0xff] }
  0x1f   :  { %349 = vxpose.xlu1.b32.cont [8/16] (narrow) %v32_v16, 32  ;;  %v63_v46 = vld [vmem:[%s1967_s0 + $0x1b0] sm:$0xff]  ;;  %v49_v47 = vld [vmem:[%s1967_s0 + $0x140] sm:$0xff]  ;;  %v64_v48 = vld [vmem:[%s1967_s0 + $0x1b8] sm:$0xff] }
  0x20   :  { %v50_v49 = vld [vmem:[%s1967_s0 + $0x148] sm:$0xff]  ;;  %v65_v50 = vld [vmem:[%s1967_s0 + $0x1c0] sm:$0xff]  ;;  %v51_v51 = vld [vmem:[%s1967_s0 + $0x150] sm:$0xff] }
  0x21   :  { %v66_v52 = vld [vmem:[%s1967_s0 + $0x1c8] sm:$0xff]  ;;  %v52_v53 = vld [vmem:[%s1967_s0 + $0x158] sm:$0xff]  ;;  %v67_v54 = vld [vmem:[%s1967_s0 + $0x1d0] sm:$0xff] }
  0x22   :  { %318 = vxpose.xlu0.b32.cont [9/16] (narrow) %v17_v15, 32  ;;  %v53_v55 = vld [vmem:[%s1967_s0 + $0x160] sm:$0xff]  ;;  %v68_v56 = vld [vmem:[%s1967_s0 + $0x1d8] sm:$0xff]  ;;  %v54_v57 = vld [vmem:[%s1967_s0 + $0x168] sm:$0xff] }
  0x23   :  { %350 = vxpose.xlu1.b32.cont [9/16] (narrow) %v33_v18, 32  ;;  %v69_v58 = vld [vmem:[%s1967_s0 + $0x1e0] sm:$0xff]  ;;  %v55_v59 = vld [vmem:[%s1967_s0 + $0x170] sm:$0xff]  ;;  %v70_v60 = vld [vmem:[%s1967_s0 + $0x1e8] sm:$0xff] }
  0x24   :  { %v56_v61 = vld [vmem:[%s1967_s0 + $0x178] sm:$0xff]  ;;  %v71_v62 = vld [vmem:[%s1967_s0 + $0x1f0] sm:$0xff]  ;;  %v73_v63 = vld [vmem:[%s1967_s0 + $0x200] sm:$0xff] }
  0x25   :  { %v72_v0 = vld [vmem:[%s1967_s0 + $0x1f8] sm:$0xff]  ;;  %v74_v1 = vld [vmem:[%s1967_s0 + $0x208] sm:$0xff]  ;;  %v89_v2 = vld [vmem:[%s1967_s0 + $0x280] sm:$0xff] }
  0x26   :  { %319 = vxpose.xlu0.b32.cont [10/16] (narrow) %v18_v17, 32  ;;  %v75_v3 = vld [vmem:[%s1967_s0 + $0x210] sm:$0xff]  ;;  %v90_v4 = vld [vmem:[%s1967_s0 + $0x288] sm:$0xff]  ;;  %v76_v5 = vld [vmem:[%s1967_s0 + $0x218] sm:$0xff] }
  0x27   :  { %351 = vxpose.xlu1.b32.cont [10/16] (narrow) %v34_v20, 32  ;;  %v91_v6 = vld [vmem:[%s1967_s0 + $0x290] sm:$0xff]  ;;  %v77_v7 = vld [vmem:[%s1967_s0 + $0x220] sm:$0xff]  ;;  %v92_v8 = vld [vmem:[%s1967_s0 + $0x298] sm:$0xff] }
  0x28   :  { %v78_v9 = vld [vmem:[%s1967_s0 + $0x228] sm:$0xff]  ;;  %v93_v10 = vld [vmem:[%s1967_s0 + $0x2a0] sm:$0xff]  ;;  %v79_v11 = vld [vmem:[%s1967_s0 + $0x230] sm:$0xff] }
  0x29   :  { %v94_v12 = vld [vmem:[%s1967_s0 + $0x2a8] sm:$0xff]  ;;  %v80_v13 = vld [vmem:[%s1967_s0 + $0x238] sm:$0xff]  ;;  %v95_v14 = vld [vmem:[%s1967_s0 + $0x2b0] sm:$0xff] }
  0x2a   :  { %320 = vxpose.xlu0.b32.cont [11/16] (narrow) %v19_v19, 32  ;;  %v81_v15 = vld [vmem:[%s1967_s0 + $0x240] sm:$0xff]  ;;  %v96_v16 = vld [vmem:[%s1967_s0 + $0x2b8] sm:$0xff]  ;;  %v82_v17 = vld [vmem:[%s1967_s0 + $0x248] sm:$0xff] }
  0x2b   :  { %352 = vxpose.xlu1.b32.cont [11/16] (narrow) %v35_v22, 32  ;;  %v97_v18 = vld [vmem:[%s1967_s0 + $0x2c0] sm:$0xff]  ;;  %v83_v19 = vld [vmem:[%s1967_s0 + $0x250] sm:$0xff]  ;;  %v98_v20 = vld [vmem:[%s1967_s0 + $0x2c8] sm:$0xff] }
  0x2c   :  { %v99_v22 = vld [vmem:[%s1967_s0 + $0x2d0] sm:$0xff] }
  0x2e   :  { %321 = vxpose.xlu0.b32.cont [12/16] (narrow) %v20_v21, 32  ;;  %v84_v21 = vld [vmem:[%s1967_s0 + $0x258] sm:$0xff] }
  0x2f   :  { %353 = vxpose.xlu1.b32.cont [12/16] (narrow) %v36_v24, 32  ;;  %v100_v24 = vld [vmem:[%s1967_s0 + $0x2d8] sm:$0xff] }
  0x32   :  { %322 = vxpose.xlu0.b32.cont [13/16] (narrow) %v21_v23, 32  ;;  %v85_v23 = vld [vmem:[%s1967_s0 + $0x260] sm:$0xff] }
  0x33   :  { %354 = vxpose.xlu1.b32.cont [13/16] (narrow) %v37_v26, 32  ;;  %v101_v26 = vld [vmem:[%s1967_s0 + $0x2e0] sm:$0xff] }
  0x36   :  { %323 = vxpose.xlu0.b32.cont [14/16] (narrow) %v22_v25, 32  ;;  %v86_v25 = vld [vmem:[%s1967_s0 + $0x268] sm:$0xff] }
  0x37   :  { %355 = vxpose.xlu1.b32.cont [14/16] (narrow) %v38_v28, 32  ;;  %v102_v28 = vld [vmem:[%s1967_s0 + $0x2e8] sm:$0xff] }
  0x3a   :  { %324 = vxpose.xlu0.b32.cont [15/16] (narrow) %v23_v27, 32  ;;  %v87_v27 = vld [vmem:[%s1967_s0 + $0x270] sm:$0xff] }
  0x3b   :  { %356 = vxpose.xlu1.b32.cont [15/16] (narrow) %v39_v30, 32  ;;  %v103_v30 = vld [vmem:[%s1967_s0 + $0x2f0] sm:$0xff] }
  0x3e   :  { %325 = vxpose.xlu0.b32.end [16/16] (narrow) %v24_v29, 32  ;;  %v88_v29 = vld [vmem:[%s1967_s0 + $0x278] sm:$0xff] }
  0x3f   :  { %357 = vxpose.xlu1.b32.end [16/16] (narrow) %v40_v32, 32  ;;  %v104_v32 = vld [vmem:[%s1967_s0 + $0x2f8] sm:$0xff] }
  0x42   :  { %374 = vxpose.xlu0.b32.start [1/16] (narrow) %v41_v31, 32  ;;  %v105_v31 = vld [vmem:[%s1967_s0 + $0x300] sm:$0xff] }
  0x43   :  { %406 = vxpose.xlu1.b32.start [1/16] (narrow) %v57_v34, 32  ;;  %v121_v34 = vld [vmem:[%s1967_s0 + $0x380] sm:$0xff] }
  0x46   :  { %375 = vxpose.xlu0.b32.cont [2/16] (narrow) %v42_v33, 32  ;;  %v106_v33 = vld [vmem:[%s1967_s0 + $0x308] sm:$0xff] }
  0x47   :  { %407 = vxpose.xlu1.b32.cont [2/16] (narrow) %v58_v36, 32  ;;  %v122_v36 = vld [vmem:[%s1967_s0 + $0x388] sm:$0xff] }
  0x4a   :  { %376 = vxpose.xlu0.b32.cont [3/16] (narrow) %v43_v35, 32  ;;  %v107_v35 = vld [vmem:[%s1967_s0 + $0x310] sm:$0xff] }
  0x4b   :  { %408 = vxpose.xlu1.b32.cont [3/16] (narrow) %v59_v38, 32  ;;  %v123_v38 = vld [vmem:[%s1967_s0 + $0x390] sm:$0xff] }
  0x4e   :  { %377 = vxpose.xlu0.b32.cont [4/16] (narrow) %v44_v37, 32  ;;  %v108_v37 = vld [vmem:[%s1967_s0 + $0x318] sm:$0xff] }
  0x4f   :  { %409 = vxpose.xlu1.b32.cont [4/16] (narrow) %v60_v40, 32  ;;  %v124_v40 = vld [vmem:[%s1967_s0 + $0x398] sm:$0xff] }
  0x52   :  { %378 = vxpose.xlu0.b32.cont [5/16] (narrow) %v45_v39, 32  ;;  %v109_v39 = vld [vmem:[%s1967_s0 + $0x320] sm:$0xff] }
  0x53   :  { %410 = vxpose.xlu1.b32.cont [5/16] (narrow) %v61_v42, 32  ;;  %v125_v42 = vld [vmem:[%s1967_s0 + $0x3a0] sm:$0xff] }
  0x56   :  { %379 = vxpose.xlu0.b32.cont [6/16] (narrow) %v46_v41, 32  ;;  %v110_v41 = vld [vmem:[%s1967_s0 + $0x328] sm:$0xff] }
  0x57   :  { %411 = vxpose.xlu1.b32.cont [6/16] (narrow) %v62_v44, 32  ;;  %v126_v44 = vld [vmem:[%s1967_s0 + $0x3a8] sm:$0xff] }
  0x5a   :  { %380 = vxpose.xlu0.b32.cont [7/16] (narrow) %v47_v43, 32  ;;  %v111_v43 = vld [vmem:[%s1967_s0 + $0x330] sm:$0xff] }
  0x5b   :  { %412 = vxpose.xlu1.b32.cont [7/16] (narrow) %v63_v46, 32  ;;  %v127_v46 = vld [vmem:[%s1967_s0 + $0x3b0] sm:$0xff] }
  0x5e   :  { %381 = vxpose.xlu0.b32.cont [8/16] (narrow) %v48_v45, 32  ;;  %v112_v45 = vld [vmem:[%s1967_s0 + $0x338] sm:$0xff] }
  0x5f   :  { %413 = vxpose.xlu1.b32.cont [8/16] (narrow) %v64_v48, 32  ;;  %v128_v48 = vld [vmem:[%s1967_s0 + $0x3b8] sm:$0xff] }
  0x62   :  { %382 = vxpose.xlu0.b32.cont [9/16] (narrow) %v49_v47, 32  ;;  %v113_v47 = vld [vmem:[%s1967_s0 + $0x340] sm:$0xff] }
  0x63   :  { %414 = vxpose.xlu1.b32.cont [9/16] (narrow) %v65_v50, 32  ;;  %v129_v50 = vld [vmem:[%s1967_s0 + $0x3c0] sm:$0xff] }
  0x66   :  { %383 = vxpose.xlu0.b32.cont [10/16] (narrow) %v50_v49, 32  ;;  %v114_v49 = vld [vmem:[%s1967_s0 + $0x348] sm:$0xff] }
  0x67   :  { %415 = vxpose.xlu1.b32.cont [10/16] (narrow) %v66_v52, 32  ;;  %v130_v52 = vld [vmem:[%s1967_s0 + $0x3c8] sm:$0xff] }
  0x6a   :  { %384 = vxpose.xlu0.b32.cont [11/16] (narrow) %v51_v51, 32  ;;  %v115_v51 = vld [vmem:[%s1967_s0 + $0x350] sm:$0xff] }
  0x6b   :  { %416 = vxpose.xlu1.b32.cont [11/16] (narrow) %v67_v54, 32  ;;  %v131_v54 = vld [vmem:[%s1967_s0 + $0x3d0] sm:$0xff] }
  0x6e   :  { %385 = vxpose.xlu0.b32.cont [12/16] (narrow) %v52_v53, 32  ;;  %v116_v53 = vld [vmem:[%s1967_s0 + $0x358] sm:$0xff] }
  0x6f   :  { %417 = vxpose.xlu1.b32.cont [12/16] (narrow) %v68_v56, 32  ;;  %v132_v56 = vld [vmem:[%s1967_s0 + $0x3d8] sm:$0xff] }
  0x72   :  { %386 = vxpose.xlu0.b32.cont [13/16] (narrow) %v53_v55, 32  ;;  %v117_v55 = vld [vmem:[%s1967_s0 + $0x360] sm:$0xff] }
  0x73   :  { %418 = vxpose.xlu1.b32.cont [13/16] (narrow) %v69_v58, 32  ;;  %v133_v58 = vld [vmem:[%s1967_s0 + $0x3e0] sm:$0xff] }
  0x76   :  { %387 = vxpose.xlu0.b32.cont [14/16] (narrow) %v54_v57, 32  ;;  %v118_v57 = vld [vmem:[%s1967_s0 + $0x368] sm:$0xff] }
  0x77   :  { %419 = vxpose.xlu1.b32.cont [14/16] (narrow) %v70_v60, 32  ;;  %v134_v60 = vld [vmem:[%s1967_s0 + $0x3e8] sm:$0xff] }
  0x7a   :  { %388 = vxpose.xlu0.b32.cont [15/16] (narrow) %v55_v59, 32  ;;  %v119_v59 = vld [vmem:[%s1967_s0 + $0x370] sm:$0xff] }
  0x7b   :  { %420 = vxpose.xlu1.b32.cont [15/16] (narrow) %v71_v62, 32  ;;  %v135_v62 = vld [vmem:[%s1967_s0 + $0x3f0] sm:$0xff] }
  0x7e   :  { %389 = vxpose.xlu0.b32.end [16/16] (narrow) %v56_v61, 32  ;;  %v120_v61 = vld [vmem:[%s1967_s0 + $0x378] sm:$0xff] }
  0x7f   :  { %421 = vxpose.xlu1.b32.end [16/16] (narrow) %v72_v0, 32  ;;  %v136_v0 = vld [vmem:[%s1967_s0 + $0x3f8] sm:$0xff] }
  0x82   :  { %438 = vxpose.xlu0.b32.start [1/16] (narrow) %v73_v63, 32  ;;  %v137_v63 = vld [vmem:[%s1967_s0 + $0x400] sm:$0xff] }
  0x83   :  { %470 = vxpose.xlu1.b32.start [1/16] (narrow) %v89_v2, 32  ;;  %v153_v2 = vld [vmem:[%s1967_s0 + $0x480] sm:$0xff] }
  0x86   :  { %439 = vxpose.xlu0.b32.cont [2/16] (narrow) %v74_v1, 32  ;;  %v138_v1 = vld [vmem:[%s1967_s0 + $0x408] sm:$0xff] }
  0x87   :  { %471 = vxpose.xlu1.b32.cont [2/16] (narrow) %v90_v4, 32  ;;  %v154_v4 = vld [vmem:[%s1967_s0 + $0x488] sm:$0xff] }
  0x8a   :  { %440 = vxpose.xlu0.b32.cont [3/16] (narrow) %v75_v3, 32  ;;  %v139_v3 = vld [vmem:[%s1967_s0 + $0x410] sm:$0xff] }
  0x8b   :  { %472 = vxpose.xlu1.b32.cont [3/16] (narrow) %v91_v6, 32  ;;  %v155_v6 = vld [vmem:[%s1967_s0 + $0x490] sm:$0xff] }
  0x8e   :  { %441 = vxpose.xlu0.b32.cont [4/16] (narrow) %v76_v5, 32  ;;  %v140_v5 = vld [vmem:[%s1967_s0 + $0x418] sm:$0xff] }
  0x8f   :  { %473 = vxpose.xlu1.b32.cont [4/16] (narrow) %v92_v8, 32  ;;  %v156_v8 = vld [vmem:[%s1967_s0 + $0x498] sm:$0xff] }
  0x92   :  { %442 = vxpose.xlu0.b32.cont [5/16] (narrow) %v77_v7, 32  ;;  %v141_v7 = vld [vmem:[%s1967_s0 + $0x420] sm:$0xff] }
  0x93   :  { %474 = vxpose.xlu1.b32.cont [5/16] (narrow) %v93_v10, 32  ;;  %v157_v10 = vld [vmem:[%s1967_s0 + $0x4a0] sm:$0xff] }
  0x96   :  { %443 = vxpose.xlu0.b32.cont [6/16] (narrow) %v78_v9, 32  ;;  %v142_v9 = vld [vmem:[%s1967_s0 + $0x428] sm:$0xff] }
  0x97   :  { %475 = vxpose.xlu1.b32.cont [6/16] (narrow) %v94_v12, 32  ;;  %v158_v12 = vld [vmem:[%s1967_s0 + $0x4a8] sm:$0xff] }
  0x9a   :  { %444 = vxpose.xlu0.b32.cont [7/16] (narrow) %v79_v11, 32  ;;  %v143_v11 = vld [vmem:[%s1967_s0 + $0x430] sm:$0xff] }
  0x9b   :  { %476 = vxpose.xlu1.b32.cont [7/16] (narrow) %v95_v14, 32  ;;  %v159_v14 = vld [vmem:[%s1967_s0 + $0x4b0] sm:$0xff] }
  0x9e   :  { %445 = vxpose.xlu0.b32.cont [8/16] (narrow) %v80_v13, 32  ;;  %v144_v13 = vld [vmem:[%s1967_s0 + $0x438] sm:$0xff] }
  0x9f   :  { %477 = vxpose.xlu1.b32.cont [8/16] (narrow) %v96_v16, 32  ;;  %v160_v16 = vld [vmem:[%s1967_s0 + $0x4b8] sm:$0xff] }
  0xa2   :  { %446 = vxpose.xlu0.b32.cont [9/16] (narrow) %v81_v15, 32  ;;  %v145_v15 = vld [vmem:[%s1967_s0 + $0x440] sm:$0xff] }
  0xa3   :  { %478 = vxpose.xlu1.b32.cont [9/16] (narrow) %v97_v18, 32  ;;  %v161_v18 = vld [vmem:[%s1967_s0 + $0x4c0] sm:$0xff] }
  0xa6   :  { %447 = vxpose.xlu0.b32.cont [10/16] (narrow) %v82_v17, 32  ;;  %v146_v17 = vld [vmem:[%s1967_s0 + $0x448] sm:$0xff] }
  0xa7   :  { %479 = vxpose.xlu1.b32.cont [10/16] (narrow) %v98_v20, 32  ;;  %v162_v20 = vld [vmem:[%s1967_s0 + $0x4c8] sm:$0xff] }
  0xaa   :  { %448 = vxpose.xlu0.b32.cont [11/16] (narrow) %v83_v19, 32  ;;  %v147_v19 = vld [vmem:[%s1967_s0 + $0x450] sm:$0xff] }
  0xab   :  { %480 = vxpose.xlu1.b32.cont [11/16] (narrow) %v99_v22, 32  ;;  %v163_v22 = vld [vmem:[%s1967_s0 + $0x4d0] sm:$0xff] }
  0xae   :  { %449 = vxpose.xlu0.b32.cont [12/16] (narrow) %v84_v21, 32  ;;  %v148_v21 = vld [vmem:[%s1967_s0 + $0x458] sm:$0xff] }
  0xaf   :  { %481 = vxpose.xlu1.b32.cont [12/16] (narrow) %v100_v24, 32  ;;  %v164_v24 = vld [vmem:[%s1967_s0 + $0x4d8] sm:$0xff] }
  0xb2   :  { %450 = vxpose.xlu0.b32.cont [13/16] (narrow) %v85_v23, 32  ;;  %v149_v23 = vld [vmem:[%s1967_s0 + $0x460] sm:$0xff] }
  0xb3   :  { %482 = vxpose.xlu1.b32.cont [13/16] (narrow) %v101_v26, 32  ;;  %v165_v26 = vld [vmem:[%s1967_s0 + $0x4e0] sm:$0xff] }
  0xb6   :  { %451 = vxpose.xlu0.b32.cont [14/16] (narrow) %v86_v25, 32  ;;  %v150_v25 = vld [vmem:[%s1967_s0 + $0x468] sm:$0xff] }
  0xb7   :  { %483 = vxpose.xlu1.b32.cont [14/16] (narrow) %v102_v28, 32  ;;  %v166_v28 = vld [vmem:[%s1967_s0 + $0x4e8] sm:$0xff] }
  0xba   :  { %452 = vxpose.xlu0.b32.cont [15/16] (narrow) %v87_v27, 32  ;;  %v151_v27 = vld [vmem:[%s1967_s0 + $0x470] sm:$0xff] }
  0xbb   :  { %484 = vxpose.xlu1.b32.cont [15/16] (narrow) %v103_v30, 32  ;;  %v167_v30 = vld [vmem:[%s1967_s0 + $0x4f0] sm:$0xff] }
  0xbe   :  { %453 = vxpose.xlu0.b32.end [16/16] (narrow) %v88_v29, 32  ;;  %v152_v29 = vld [vmem:[%s1967_s0 + $0x478] sm:$0xff] }
  0xbf   :  { %485 = vxpose.xlu1.b32.end [16/16] (narrow) %v104_v32, 32  ;;  %v168_v32 = vld [vmem:[%s1967_s0 + $0x4f8] sm:$0xff] }
  0xc2   :  { %502 = vxpose.xlu0.b32.start [1/16] (narrow) %v105_v31, 32  ;;  %v169_v31 = vld [vmem:[%s1967_s0 + $0x500] sm:$0xff] }
  0xc3   :  { %534 = vxpose.xlu1.b32.start [1/16] (narrow) %v121_v34, 32  ;;  %v185_v34 = vld [vmem:[%s1967_s0 + $0x580] sm:$0xff] }
  0xc6   :  { %503 = vxpose.xlu0.b32.cont [2/16] (narrow) %v106_v33, 32  ;;  %v170_v33 = vld [vmem:[%s1967_s0 + $0x508] sm:$0xff] }
  0xc7   :  { %535 = vxpose.xlu1.b32.cont [2/16] (narrow) %v122_v36, 32  ;;  %v186_v36 = vld [vmem:[%s1967_s0 + $0x588] sm:$0xff] }
  0xca   :  { %504 = vxpose.xlu0.b32.cont [3/16] (narrow) %v107_v35, 32  ;;  %v171_v35 = vld [vmem:[%s1967_s0 + $0x510] sm:$0xff] }
  0xcb   :  { %536 = vxpose.xlu1.b32.cont [3/16] (narrow) %v123_v38, 32  ;;  %v187_v38 = vld [vmem:[%s1967_s0 + $0x590] sm:$0xff] }
  0xce   :  { %505 = vxpose.xlu0.b32.cont [4/16] (narrow) %v108_v37, 32  ;;  %v172_v37 = vld [vmem:[%s1967_s0 + $0x518] sm:$0xff] }
  0xcf   :  { %537 = vxpose.xlu1.b32.cont [4/16] (narrow) %v124_v40, 32  ;;  %v188_v40 = vld [vmem:[%s1967_s0 + $0x598] sm:$0xff] }
  0xd2   :  { %506 = vxpose.xlu0.b32.cont [5/16] (narrow) %v109_v39, 32  ;;  %v173_v39 = vld [vmem:[%s1967_s0 + $0x520] sm:$0xff] }
  0xd3   :  { %538 = vxpose.xlu1.b32.cont [5/16] (narrow) %v125_v42, 32  ;;  %v189_v42 = vld [vmem:[%s1967_s0 + $0x5a0] sm:$0xff] }
  0xd6   :  { %507 = vxpose.xlu0.b32.cont [6/16] (narrow) %v110_v41, 32  ;;  %v174_v41 = vld [vmem:[%s1967_s0 + $0x528] sm:$0xff] }
  0xd7   :  { %539 = vxpose.xlu1.b32.cont [6/16] (narrow) %v126_v44, 32  ;;  %v190_v44 = vld [vmem:[%s1967_s0 + $0x5a8] sm:$0xff] }
  0xda   :  { %508 = vxpose.xlu0.b32.cont [7/16] (narrow) %v111_v43, 32  ;;  %v175_v43 = vld [vmem:[%s1967_s0 + $0x530] sm:$0xff] }
  0xdb   :  { %540 = vxpose.xlu1.b32.cont [7/16] (narrow) %v127_v46, 32  ;;  %v191_v46 = vld [vmem:[%s1967_s0 + $0x5b0] sm:$0xff] }
  0xde   :  { %509 = vxpose.xlu0.b32.cont [8/16] (narrow) %v112_v45, 32  ;;  %v176_v45 = vld [vmem:[%s1967_s0 + $0x538] sm:$0xff] }
  0xdf   :  { %541 = vxpose.xlu1.b32.cont [8/16] (narrow) %v128_v48, 32  ;;  %v192_v48 = vld [vmem:[%s1967_s0 + $0x5b8] sm:$0xff] }
  0xe2   :  { %510 = vxpose.xlu0.b32.cont [9/16] (narrow) %v113_v47, 32  ;;  %v177_v47 = vld [vmem:[%s1967_s0 + $0x540] sm:$0xff] }
  0xe3   :  { %542 = vxpose.xlu1.b32.cont [9/16] (narrow) %v129_v50, 32  ;;  %v193_v50 = vld [vmem:[%s1967_s0 + $0x5c0] sm:$0xff] }
  0xe6   :  { %511 = vxpose.xlu0.b32.cont [10/16] (narrow) %v114_v49, 32  ;;  %v178_v49 = vld [vmem:[%s1967_s0 + $0x548] sm:$0xff] }
  0xe7   :  { %543 = vxpose.xlu1.b32.cont [10/16] (narrow) %v130_v52, 32  ;;  %v194_v52 = vld [vmem:[%s1967_s0 + $0x5c8] sm:$0xff] }
  0xea   :  { %512 = vxpose.xlu0.b32.cont [11/16] (narrow) %v115_v51, 32  ;;  %v179_v51 = vld [vmem:[%s1967_s0 + $0x550] sm:$0xff] }
  0xeb   :  { %544 = vxpose.xlu1.b32.cont [11/16] (narrow) %v131_v54, 32  ;;  %v195_v54 = vld [vmem:[%s1967_s0 + $0x5d0] sm:$0xff] }
  0xee   :  { %513 = vxpose.xlu0.b32.cont [12/16] (narrow) %v116_v53, 32  ;;  %v180_v53 = vld [vmem:[%s1967_s0 + $0x558] sm:$0xff] }
  0xef   :  { %545 = vxpose.xlu1.b32.cont [12/16] (narrow) %v132_v56, 32  ;;  %v196_v56 = vld [vmem:[%s1967_s0 + $0x5d8] sm:$0xff] }
  0xf2   :  { %514 = vxpose.xlu0.b32.cont [13/16] (narrow) %v117_v55, 32  ;;  %v181_v55 = vld [vmem:[%s1967_s0 + $0x560] sm:$0xff] }
  0xf3   :  { %546 = vxpose.xlu1.b32.cont [13/16] (narrow) %v133_v58, 32  ;;  %v197_v58 = vld [vmem:[%s1967_s0 + $0x5e0] sm:$0xff] }
  0xf6   :  { %515 = vxpose.xlu0.b32.cont [14/16] (narrow) %v118_v57, 32  ;;  %v182_v57 = vld [vmem:[%s1967_s0 + $0x568] sm:$0xff] }
  0xf7   :  { %547 = vxpose.xlu1.b32.cont [14/16] (narrow) %v134_v60, 32  ;;  %v198_v60 = vld [vmem:[%s1967_s0 + $0x5e8] sm:$0xff] }
  0xfa   :  { %516 = vxpose.xlu0.b32.cont [15/16] (narrow) %v119_v59, 32  ;;  %v183_v59 = vld [vmem:[%s1967_s0 + $0x570] sm:$0xff] }
  0xfb   :  { %548 = vxpose.xlu1.b32.cont [15/16] (narrow) %v135_v62, 32  ;;  %v199_v62 = vld [vmem:[%s1967_s0 + $0x5f0] sm:$0xff] }
  0xfe   :  { %517 = vxpose.xlu0.b32.end [16/16] (narrow) %v120_v61, 32  ;;  %v184_v61 = vld [vmem:[%s1967_s0 + $0x578] sm:$0xff] }
  0xff   :  { %549 = vxpose.xlu1.b32.end [16/16] (narrow) %v136_v0, 32  ;;  %v200_v0 = vld [vmem:[%s1967_s0 + $0x5f8] sm:$0xff] }
 0x102   :  { %566 = vxpose.xlu0.b32.start [1/16] (narrow) %v137_v63, 32  ;;  %v201_v63 = vld [vmem:[%s1967_s0 + $0x600] sm:$0xff] }
 0x103   :  { %598 = vxpose.xlu1.b32.start [1/16] (narrow) %v153_v2, 32  ;;  %v217_v2 = vld [vmem:[%s1967_s0 + $0x680] sm:$0xff] }
 0x106   :  { %567 = vxpose.xlu0.b32.cont [2/16] (narrow) %v138_v1, 32  ;;  %v202_v1 = vld [vmem:[%s1967_s0 + $0x608] sm:$0xff] }
 0x107   :  { %599 = vxpose.xlu1.b32.cont [2/16] (narrow) %v154_v4, 32  ;;  %v218_v4 = vld [vmem:[%s1967_s0 + $0x688] sm:$0xff] }
 0x10a   :  { %568 = vxpose.xlu0.b32.cont [3/16] (narrow) %v139_v3, 32  ;;  %v203_v3 = vld [vmem:[%s1967_s0 + $0x610] sm:$0xff] }
 0x10b   :  { %600 = vxpose.xlu1.b32.cont [3/16] (narrow) %v155_v6, 32  ;;  %v219_v6 = vld [vmem:[%s1967_s0 + $0x690] sm:$0xff] }
 0x10e   :  { %569 = vxpose.xlu0.b32.cont [4/16] (narrow) %v140_v5, 32  ;;  %v204_v5 = vld [vmem:[%s1967_s0 + $0x618] sm:$0xff] }
 0x10f   :  { %601 = vxpose.xlu1.b32.cont [4/16] (narrow) %v156_v8, 32  ;;  %v220_v8 = vld [vmem:[%s1967_s0 + $0x698] sm:$0xff] }
 0x112   :  { %570 = vxpose.xlu0.b32.cont [5/16] (narrow) %v141_v7, 32  ;;  %v205_v7 = vld [vmem:[%s1967_s0 + $0x620] sm:$0xff] }
 0x113   :  { %602 = vxpose.xlu1.b32.cont [5/16] (narrow) %v157_v10, 32  ;;  %v221_v10 = vld [vmem:[%s1967_s0 + $0x6a0] sm:$0xff] }
 0x116   :  { %571 = vxpose.xlu0.b32.cont [6/16] (narrow) %v142_v9, 32  ;;  %v206_v9 = vld [vmem:[%s1967_s0 + $0x628] sm:$0xff] }
 0x117   :  { %603 = vxpose.xlu1.b32.cont [6/16] (narrow) %v158_v12, 32  ;;  %v222_v12 = vld [vmem:[%s1967_s0 + $0x6a8] sm:$0xff] }
 0x11a   :  { %572 = vxpose.xlu0.b32.cont [7/16] (narrow) %v143_v11, 32  ;;  %v207_v11 = vld [vmem:[%s1967_s0 + $0x630] sm:$0xff] }
 0x11b   :  { %604 = vxpose.xlu1.b32.cont [7/16] (narrow) %v159_v14, 32  ;;  %v223_v14 = vld [vmem:[%s1967_s0 + $0x6b0] sm:$0xff] }
 0x11e   :  { %573 = vxpose.xlu0.b32.cont [8/16] (narrow) %v144_v13, 32  ;;  %v208_v13 = vld [vmem:[%s1967_s0 + $0x638] sm:$0xff] }
 0x11f   :  { %605 = vxpose.xlu1.b32.cont [8/16] (narrow) %v160_v16, 32  ;;  %v224_v16 = vld [vmem:[%s1967_s0 + $0x6b8] sm:$0xff] }
 0x122   :  { %574 = vxpose.xlu0.b32.cont [9/16] (narrow) %v145_v15, 32  ;;  %v209_v15 = vld [vmem:[%s1967_s0 + $0x640] sm:$0xff] }
 0x123   :  { %606 = vxpose.xlu1.b32.cont [9/16] (narrow) %v161_v18, 32  ;;  %v225_v18 = vld [vmem:[%s1967_s0 + $0x6c0] sm:$0xff] }
 0x126   :  { %575 = vxpose.xlu0.b32.cont [10/16] (narrow) %v146_v17, 32  ;;  %v210_v17 = vld [vmem:[%s1967_s0 + $0x648] sm:$0xff] }
 0x127   :  { %607 = vxpose.xlu1.b32.cont [10/16] (narrow) %v162_v20, 32  ;;  %v226_v20 = vld [vmem:[%s1967_s0 + $0x6c8] sm:$0xff] }
 0x12a   :  { %576 = vxpose.xlu0.b32.cont [11/16] (narrow) %v147_v19, 32  ;;  %v211_v19 = vld [vmem:[%s1967_s0 + $0x650] sm:$0xff] }
 0x12b   :  { %608 = vxpose.xlu1.b32.cont [11/16] (narrow) %v163_v22, 32  ;;  %v227_v22 = vld [vmem:[%s1967_s0 + $0x6d0] sm:$0xff] }
 0x12e   :  { %577 = vxpose.xlu0.b32.cont [12/16] (narrow) %v148_v21, 32  ;;  %v212_v21 = vld [vmem:[%s1967_s0 + $0x658] sm:$0xff] }
 0x12f   :  { %609 = vxpose.xlu1.b32.cont [12/16] (narrow) %v164_v24, 32  ;;  %v228_v24 = vld [vmem:[%s1967_s0 + $0x6d8] sm:$0xff] }
 0x132   :  { %578 = vxpose.xlu0.b32.cont [13/16] (narrow) %v149_v23, 32  ;;  %v213_v23 = vld [vmem:[%s1967_s0 + $0x660] sm:$0xff] }
 0x133   :  { %610 = vxpose.xlu1.b32.cont [13/16] (narrow) %v165_v26, 32  ;;  %v214_v26 = vld [vmem:[%s1967_s0 + $0x668] sm:$0xff] }
 0x136   :  { %579 = vxpose.xlu0.b32.cont [14/16] (narrow) %v150_v25, 32  ;;  %v326_v25 = vpop.trf.xlu0 }
 0x137   :  { %611 = vxpose.xlu1.b32.cont [14/16] (narrow) %v166_v28, 32  ;;  %918 = vst [vmem:[#allocation2] sm:$0xff] %v326_v25  ;;  %v261_v25 = vld [vmem:[%s1967_s0 + $0x7e0] sm:$0xff] }
 0x13a   :  { %580 = vxpose.xlu0.b32.cont [15/16] (narrow) %v151_v27, 32  ;;  %v229_v27 = vld [vmem:[%s1967_s0 + $0x6e0] sm:$0xff]  ;;  %v327_v28 = vpop.trf.xlu0 }
 0x13b   :  { %612 = vxpose.xlu1.b32.cont [15/16] (narrow) %v167_v30, 32  ;;  %938 = vst [vmem:[#allocation2 + $0x98] sm:$0xff] %v327_v28  ;;  %v230_v30 = vld [vmem:[%s1967_s0 + $0x6e8] sm:$0xff]  ;;  %v247_v28 = vld [vmem:[%s1967_s0 + $0x770] sm:$0xff] }
 0x13e   :  { %581 = vxpose.xlu0.b32.end [16/16] (narrow) %v152_v29, 32  ;;  %v215_v29 = vld [vmem:[%s1967_s0 + $0x670] sm:$0xff] }
 0x13f   :  { %613 = vxpose.xlu1.b32.end [16/16] (narrow) %v168_v32, 32  ;;  %v216_v32 = vld [vmem:[%s1967_s0 + $0x678] sm:$0xff] }
 0x142   :  { %630 = vxpose.xlu0.b32.start [1/16] (narrow) %v169_v31, 32  ;;  %v328_v31 = vpop.trf.xlu0 }
 0x143   :  { %662 = vxpose.xlu1.b32.start [1/16] (narrow) %v185_v34, 32  ;;  %957 = vst [vmem:[#allocation2 + $0x130] sm:$0xff] %v328_v31 }
 0x146   :  { %631 = vxpose.xlu0.b32.cont [2/16] (narrow) %v170_v33, 32  ;;  %v231_v33 = vld [vmem:[%s1967_s0 + $0x6f0] sm:$0xff]  ;;  %v329_v34 = vpop.trf.xlu0 }
 0x147   :  { %663 = vxpose.xlu1.b32.cont [2/16] (narrow) %v186_v36, 32  ;;  %v233_v36 = vld [vmem:[%s1967_s0 + $0x700] sm:$0xff]  ;;  %976 = vst [vmem:[#allocation2 + $0x1c8] sm:$0xff] %v329_v34 }
 0x14a   :  { %632 = vxpose.xlu0.b32.cont [3/16] (narrow) %v171_v35, 32  ;;  %v358_v35 = vpop.trf.xlu1 }
 0x14b   :  { %664 = vxpose.xlu1.b32.cont [3/16] (narrow) %v187_v38, 32  ;;  %919 = vst [vmem:[#allocation2 + $0x8] sm:$0xff] %v358_v35  ;;  %v390_v38 = vpop.trf.xlu0 }
 0x14c   :  { %920 = vst [vmem:[#allocation2 + $0x10] sm:$0xff] %v390_v38 }
 0x14e   :  { %633 = vxpose.xlu0.b32.cont [4/16] (narrow) %v172_v37, 32  ;;  %v232_v37 = vld [vmem:[%s1967_s0 + $0x6f8] sm:$0xff] }
 0x14f   :  { %665 = vxpose.xlu1.b32.cont [4/16] (narrow) %v188_v40, 32  ;;  %v234_v40 = vld [vmem:[%s1967_s0 + $0x708] sm:$0xff] }
 0x152   :  { %634 = vxpose.xlu0.b32.cont [5/16] (narrow) %v173_v39, 32  ;;  %v359_v39 = vpop.trf.xlu1 }
 0x153   :  { %666 = vxpose.xlu1.b32.cont [5/16] (narrow) %v189_v42, 32  ;;  %939 = vst [vmem:[#allocation2 + $0xa0] sm:$0xff] %v359_v39  ;;  %v391_v42 = vpop.trf.xlu0 }
 0x154   :  { %940 = vst [vmem:[#allocation2 + $0xa8] sm:$0xff] %v391_v42 }
 0x156   :  { %635 = vxpose.xlu0.b32.cont [6/16] (narrow) %v174_v41, 32  ;;  %v249_v41 = vld [vmem:[%s1967_s0 + $0x780] sm:$0xff] }
 0x157   :  { %667 = vxpose.xlu1.b32.cont [6/16] (narrow) %v190_v44, 32  ;;  %v235_v44 = vld [vmem:[%s1967_s0 + $0x710] sm:$0xff] }
 0x15a   :  { %636 = vxpose.xlu0.b32.cont [7/16] (narrow) %v175_v43, 32  ;;  %v360_v43 = vpop.trf.xlu1 }
 0x15b   :  { %668 = vxpose.xlu1.b32.cont [7/16] (narrow) %v191_v46, 32  ;;  %958 = vst [vmem:[#allocation2 + $0x138] sm:$0xff] %v360_v43  ;;  %v392_v46 = vpop.trf.xlu0 }
 0x15c   :  { %959 = vst [vmem:[#allocation2 + $0x140] sm:$0xff] %v392_v46 }
 0x15e   :  { %637 = vxpose.xlu0.b32.cont [8/16] (narrow) %v176_v45, 32  ;;  %v250_v45 = vld [vmem:[%s1967_s0 + $0x788] sm:$0xff] }
 0x15f   :  { %669 = vxpose.xlu1.b32.cont [8/16] (narrow) %v192_v48, 32  ;;  %v236_v48 = vld [vmem:[%s1967_s0 + $0x718] sm:$0xff] }
 0x162   :  { %638 = vxpose.xlu0.b32.cont [9/16] (narrow) %v177_v47, 32  ;;  %v361_v47 = vpop.trf.xlu1 }
 0x163   :  { %670 = vxpose.xlu1.b32.cont [9/16] (narrow) %v193_v50, 32  ;;  %977 = vst [vmem:[#allocation2 + $0x1d0] sm:$0xff] %v361_v47  ;;  %v393_v50 = vpop.trf.xlu0 }
 0x164   :  { %978 = vst [vmem:[#allocation2 + $0x1d8] sm:$0xff] %v393_v50 }
 0x166   :  { %639 = vxpose.xlu0.b32.cont [10/16] (narrow) %v178_v49, 32  ;;  %v251_v49 = vld [vmem:[%s1967_s0 + $0x790] sm:$0xff] }
 0x167   :  { %671 = vxpose.xlu1.b32.cont [10/16] (narrow) %v194_v52, 32  ;;  %v237_v52 = vld [vmem:[%s1967_s0 + $0x720] sm:$0xff] }
 0x16a   :  { %640 = vxpose.xlu0.b32.cont [11/16] (narrow) %v179_v51, 32  ;;  %v422_v51 = vpop.trf.xlu1 }
 0x16b   :  { %672 = vxpose.xlu1.b32.cont [11/16] (narrow) %v195_v54, 32  ;;  %921 = vst [vmem:[#allocation2 + $0x18] sm:$0xff] %v422_v51  ;;  %v454_v54 = vpop.trf.xlu0 }
 0x16c   :  { %922 = vst [vmem:[#allocation2 + $0x20] sm:$0xff] %v454_v54 }
 0x16e   :  { %641 = vxpose.xlu0.b32.cont [12/16] (narrow) %v180_v53, 32  ;;  %v252_v53 = vld [vmem:[%s1967_s0 + $0x798] sm:$0xff] }
 0x16f   :  { %673 = vxpose.xlu1.b32.cont [12/16] (narrow) %v196_v56, 32  ;;  %v238_v56 = vld [vmem:[%s1967_s0 + $0x728] sm:$0xff] }
 0x172   :  { %642 = vxpose.xlu0.b32.cont [13/16] (narrow) %v181_v55, 32  ;;  %v423_v55 = vpop.trf.xlu1 }
 0x173   :  { %674 = vxpose.xlu1.b32.cont [13/16] (narrow) %v197_v58, 32  ;;  %941 = vst [vmem:[#allocation2 + $0xb0] sm:$0xff] %v423_v55  ;;  %v455_v58 = vpop.trf.xlu0 }
 0x174   :  { %942 = vst [vmem:[#allocation2 + $0xb8] sm:$0xff] %v455_v58 }
 0x176   :  { %643 = vxpose.xlu0.b32.cont [14/16] (narrow) %v182_v57, 32  ;;  %v253_v57 = vld [vmem:[%s1967_s0 + $0x7a0] sm:$0xff] }
 0x177   :  { %675 = vxpose.xlu1.b32.cont [14/16] (narrow) %v198_v60, 32  ;;  %v239_v60 = vld [vmem:[%s1967_s0 + $0x730] sm:$0xff] }
 0x17a   :  { %644 = vxpose.xlu0.b32.cont [15/16] (narrow) %v183_v59, 32  ;;  %v424_v59 = vpop.trf.xlu1 }
 0x17b   :  { %676 = vxpose.xlu1.b32.cont [15/16] (narrow) %v199_v62, 32  ;;  %960 = vst [vmem:[#allocation2 + $0x148] sm:$0xff] %v424_v59  ;;  %v456_v62 = vpop.trf.xlu0 }
 0x17c   :  { %961 = vst [vmem:[#allocation2 + $0x150] sm:$0xff] %v456_v62 }
 0x17e   :  { %645 = vxpose.xlu0.b32.end [16/16] (narrow) %v184_v61, 32  ;;  %v254_v61 = vld [vmem:[%s1967_s0 + $0x7a8] sm:$0xff] }
 0x17f   :  { %677 = vxpose.xlu1.b32.end [16/16] (narrow) %v200_v0, 32  ;;  %v240_v0 = vld [vmem:[%s1967_s0 + $0x738] sm:$0xff] }
 0x182   :  { %694 = vxpose.xlu0.b32.start [1/16] (narrow) %v201_v63, 32  ;;  %v425_v63 = vpop.trf.xlu1 }
 0x183   :  { %726 = vxpose.xlu1.b32.start [1/16] (narrow) %v217_v2, 32  ;;  %979 = vst [vmem:[#allocation2 + $0x1e0] sm:$0xff] %v425_v63  ;;  %v457_v2 = vpop.trf.xlu0 }
 0x184   :  { %980 = vst [vmem:[#allocation2 + $0x1e8] sm:$0xff] %v457_v2 }
 0x186   :  { %695 = vxpose.xlu0.b32.cont [2/16] (narrow) %v202_v1, 32  ;;  %v255_v1 = vld [vmem:[%s1967_s0 + $0x7b0] sm:$0xff] }
 0x187   :  { %727 = vxpose.xlu1.b32.cont [2/16] (narrow) %v218_v4, 32  ;;  %v241_v4 = vld [vmem:[%s1967_s0 + $0x740] sm:$0xff] }
 0x18a   :  { %696 = vxpose.xlu0.b32.cont [3/16] (narrow) %v203_v3, 32  ;;  %v486_v3 = vpop.trf.xlu1 }
 0x18b   :  { %728 = vxpose.xlu1.b32.cont [3/16] (narrow) %v219_v6, 32  ;;  %923 = vst [vmem:[#allocation2 + $0x28] sm:$0xff] %v486_v3  ;;  %v518_v6 = vpop.trf.xlu0 }
 0x18c   :  { %924 = vst [vmem:[#allocation2 + $0x30] sm:$0xff] %v518_v6 }
 0x18e   :  { %697 = vxpose.xlu0.b32.cont [4/16] (narrow) %v204_v5, 32  ;;  %v256_v5 = vld [vmem:[%s1967_s0 + $0x7b8] sm:$0xff] }
 0x18f   :  { %729 = vxpose.xlu1.b32.cont [4/16] (narrow) %v220_v8, 32  ;;  %v242_v8 = vld [vmem:[%s1967_s0 + $0x748] sm:$0xff] }
 0x192   :  { %698 = vxpose.xlu0.b32.cont [5/16] (narrow) %v205_v7, 32  ;;  %v487_v7 = vpop.trf.xlu1 }
 0x193   :  { %730 = vxpose.xlu1.b32.cont [5/16] (narrow) %v221_v10, 32  ;;  %943 = vst [vmem:[#allocation2 + $0xc0] sm:$0xff] %v487_v7  ;;  %v519_v10 = vpop.trf.xlu0  ;;  %v274_v7 = vld [vmem:[%s1967_s0 + $0x848] sm:$0xff] }
 0x194   :  { %944 = vst [vmem:[#allocation2 + $0xc8] sm:$0xff] %v519_v10  ;;  %v275_v10 = vld [vmem:[%s1967_s0 + $0x850] sm:$0xff] }
 0x196   :  { %699 = vxpose.xlu0.b32.cont [6/16] (narrow) %v206_v9, 32  ;;  %v257_v9 = vld [vmem:[%s1967_s0 + $0x7c0] sm:$0xff] }
 0x197   :  { %731 = vxpose.xlu1.b32.cont [6/16] (narrow) %v222_v12, 32  ;;  %v243_v12 = vld [vmem:[%s1967_s0 + $0x750] sm:$0xff] }
 0x19a   :  { %700 = vxpose.xlu0.b32.cont [7/16] (narrow) %v207_v11, 32  ;;  %v488_v11 = vpop.trf.xlu1 }
 0x19b   :  { %732 = vxpose.xlu1.b32.cont [7/16] (narrow) %v223_v14, 32  ;;  %962 = vst [vmem:[#allocation2 + $0x158] sm:$0xff] %v488_v11  ;;  %v520_v14 = vpop.trf.xlu0  ;;  %v290_v11 = vld [vmem:[%s1967_s0 + $0x8c8] sm:$0xff] }
 0x19c   :  { %963 = vst [vmem:[#allocation2 + $0x160] sm:$0xff] %v520_v14  ;;  %v291_v14 = vld [vmem:[%s1967_s0 + $0x8d0] sm:$0xff] }
 0x19e   :  { %701 = vxpose.xlu0.b32.cont [8/16] (narrow) %v208_v13, 32  ;;  %v258_v13 = vld [vmem:[%s1967_s0 + $0x7c8] sm:$0xff] }
 0x19f   :  { %733 = vxpose.xlu1.b32.cont [8/16] (narrow) %v224_v16, 32  ;;  %v244_v16 = vld [vmem:[%s1967_s0 + $0x758] sm:$0xff] }
 0x1a2   :  { %702 = vxpose.xlu0.b32.cont [9/16] (narrow) %v209_v15, 32  ;;  %v489_v15 = vpop.trf.xlu1 }
 0x1a3   :  { %734 = vxpose.xlu1.b32.cont [9/16] (narrow) %v225_v18, 32  ;;  %981 = vst [vmem:[#allocation2 + $0x1f0] sm:$0xff] %v489_v15  ;;  %v521_v18 = vpop.trf.xlu0  ;;  %v277_v15 = vld [vmem:[%s1967_s0 + $0x860] sm:$0xff] }
 0x1a4   :  { %982 = vst [vmem:[#allocation2 + $0x1f8] sm:$0xff] %v521_v18  ;;  %v293_v18 = vld [vmem:[%s1967_s0 + $0x8e0] sm:$0xff] }
 0x1a6   :  { %703 = vxpose.xlu0.b32.cont [10/16] (narrow) %v210_v17, 32  ;;  %v259_v17 = vld [vmem:[%s1967_s0 + $0x7d0] sm:$0xff] }
 0x1a7   :  { %735 = vxpose.xlu1.b32.cont [10/16] (narrow) %v226_v20, 32  ;;  %v245_v20 = vld [vmem:[%s1967_s0 + $0x760] sm:$0xff] }
 0x1aa   :  { %704 = vxpose.xlu0.b32.cont [11/16] (narrow) %v211_v19, 32  ;;  %v550_v19 = vpop.trf.xlu1 }
 0x1ab   :  { %736 = vxpose.xlu1.b32.cont [11/16] (narrow) %v227_v22, 32  ;;  %925 = vst [vmem:[#allocation2 + $0x38] sm:$0xff] %v550_v19  ;;  %v582_v22 = vpop.trf.xlu0  ;;  %v279_v19 = vld [vmem:[%s1967_s0 + $0x870] sm:$0xff] }
 0x1ac   :  { %926 = vst [vmem:[#allocation2 + $0x40] sm:$0xff] %v582_v22  ;;  %v295_v22 = vld [vmem:[%s1967_s0 + $0x8f0] sm:$0xff] }
 0x1ae   :  { %705 = vxpose.xlu0.b32.cont [12/16] (narrow) %v212_v21, 32  ;;  %v260_v21 = vld [vmem:[%s1967_s0 + $0x7d8] sm:$0xff] }
 0x1af   :  { %737 = vxpose.xlu1.b32.cont [12/16] (narrow) %v228_v24, 32  ;;  %v246_v24 = vld [vmem:[%s1967_s0 + $0x768] sm:$0xff] }
 0x1b2   :  { %706 = vxpose.xlu0.b32.cont [13/16] (narrow) %v213_v23, 32  ;;  %v551_v23 = vpop.trf.xlu1 }
 0x1b3   :  { %738 = vxpose.xlu1.b32.cont [13/16] (narrow) %v229_v27, 32  ;;  %945 = vst [vmem:[#allocation2 + $0xd0] sm:$0xff] %v551_v23  ;;  %v297_v23 = vld [vmem:[%s1967_s0 + $0x900] sm:$0xff] }
 0x1b6   :  { %707 = vxpose.xlu0.b32.cont [14/16] (narrow) %v214_v26, 32  ;;  %v583_v26 = vpop.trf.xlu0  ;;  %v552_v27 = vpop.trf.xlu1 }
 0x1b7   :  { %739 = vxpose.xlu1.b32.cont [14/16] (narrow) %v230_v30, 32  ;;  %946 = vst [vmem:[#allocation2 + $0xd8] sm:$0xff] %v583_v26  ;;  %964 = vst [vmem:[#allocation2 + $0x168] sm:$0xff] %v552_v27  ;;  %v298_v26 = vld [vmem:[%s1967_s0 + $0x908] sm:$0xff] }
 0x1ba   :  { %708 = vxpose.xlu0.b32.cont [15/16] (narrow) %v215_v29, 32  ;;  %v262_v29 = vld [vmem:[%s1967_s0 + $0x7e8] sm:$0xff]  ;;  %v584_v30 = vpop.trf.xlu0  ;;  %v553_v31 = vpop.trf.xlu1 }
 0x1bb   :  { %740 = vxpose.xlu1.b32.cont [15/16] (narrow) %v231_v33, 32  ;;  %965 = vst [vmem:[#allocation2 + $0x170] sm:$0xff] %v584_v30  ;;  %983 = vst [vmem:[#allocation2 + $0x200] sm:$0xff] %v553_v31  ;;  %v263_v33 = vld [vmem:[%s1967_s0 + $0x7f0] sm:$0xff]  ;;  %v300_v31 = vld [vmem:[%s1967_s0 + $0x918] sm:$0xff] }
 0x1be   :  { %709 = vxpose.xlu0.b32.end [16/16] (narrow) %v216_v32, 32  ;;  %v248_v32 = vld [vmem:[%s1967_s0 + $0x778] sm:$0xff]  ;;  %v585_v34 = vpop.trf.xlu0  ;;  %v614_v35 = vpop.trf.xlu1 }
 0x1bf   :  { %741 = vxpose.xlu1.b32.end [16/16] (narrow) %v232_v37, 32  ;;  %984 = vst [vmem:[#allocation2 + $0x208] sm:$0xff] %v585_v34  ;;  %927 = vst [vmem:[#allocation2 + $0x48] sm:$0xff] %v614_v35  ;;  %v264_v37 = vld [vmem:[%s1967_s0 + $0x7f8] sm:$0xff]  ;;  %v301_v34 = vld [vmem:[%s1967_s0 + $0x920] sm:$0xff] }
 0x1c2   :  { %758 = vxpose.xlu0.b32.start [1/16] (narrow) %v233_v36, 32  ;;  %v265_v36 = vld [vmem:[%s1967_s0 + $0x800] sm:$0xff]  ;;  %v646_v38 = vpop.trf.xlu0  ;;  %v615_v39 = vpop.trf.xlu1 }
 0x1c3   :  { %790 = vxpose.xlu1.b32.start [1/16] (narrow) %v249_v41, 32  ;;  %928 = vst [vmem:[#allocation2 + $0x50] sm:$0xff] %v646_v38  ;;  %947 = vst [vmem:[#allocation2 + $0xe0] sm:$0xff] %v615_v39  ;;  %v281_v41 = vld [vmem:[%s1967_s0 + $0x880] sm:$0xff]  ;;  %v303_v38 = vld [vmem:[%s1967_s0 + $0x930] sm:$0xff] }
 0x1c4   :  { %v304_v39 = vld [vmem:[%s1967_s0 + $0x938] sm:$0xff] }
 0x1c6   :  { %759 = vxpose.xlu0.b32.cont [2/16] (narrow) %v234_v40, 32  ;;  %v266_v40 = vld [vmem:[%s1967_s0 + $0x808] sm:$0xff]  ;;  %v647_v42 = vpop.trf.xlu0  ;;  %v616_v43 = vpop.trf.xlu1 }
 0x1c7   :  { %791 = vxpose.xlu1.b32.cont [2/16] (narrow) %v250_v45, 32  ;;  %948 = vst [vmem:[#allocation2 + $0xe8] sm:$0xff] %v647_v42  ;;  %966 = vst [vmem:[#allocation2 + $0x178] sm:$0xff] %v616_v43  ;;  %v282_v45 = vld [vmem:[%s1967_s0 + $0x888] sm:$0xff]  ;;  %v307_v42 = vld [vmem:[%s1967_s0 + $0x950] sm:$0xff] }
 0x1c8   :  { %v308_v43 = vld [vmem:[%s1967_s0 + $0x958] sm:$0xff] }
 0x1ca   :  { %760 = vxpose.xlu0.b32.cont [3/16] (narrow) %v235_v44, 32  ;;  %v267_v44 = vld [vmem:[%s1967_s0 + $0x810] sm:$0xff]  ;;  %v648_v46 = vpop.trf.xlu0  ;;  %v617_v47 = vpop.trf.xlu1 }
 0x1cb   :  { %792 = vxpose.xlu1.b32.cont [3/16] (narrow) %v251_v49, 32  ;;  %967 = vst [vmem:[#allocation2 + $0x180] sm:$0xff] %v648_v46  ;;  %985 = vst [vmem:[#allocation2 + $0x210] sm:$0xff] %v617_v47  ;;  %v283_v49 = vld [vmem:[%s1967_s0 + $0x890] sm:$0xff] }
 0x1ce   :  { %761 = vxpose.xlu0.b32.cont [4/16] (narrow) %v236_v48, 32  ;;  %v268_v48 = vld [vmem:[%s1967_s0 + $0x818] sm:$0xff]  ;;  %v649_v50 = vpop.trf.xlu0  ;;  %v678_v51 = vpop.trf.xlu1 }
 0x1cf   :  { %793 = vxpose.xlu1.b32.cont [4/16] (narrow) %v252_v53, 32  ;;  %986 = vst [vmem:[#allocation2 + $0x218] sm:$0xff] %v649_v50  ;;  %929 = vst [vmem:[#allocation2 + $0x58] sm:$0xff] %v678_v51  ;;  %v284_v53 = vld [vmem:[%s1967_s0 + $0x898] sm:$0xff] }
 0x1d2   :  { %762 = vxpose.xlu0.b32.cont [5/16] (narrow) %v237_v52, 32  ;;  %v269_v52 = vld [vmem:[%s1967_s0 + $0x820] sm:$0xff]  ;;  %v679_v55 = vpop.trf.xlu1 }
 0x1d3   :  { %794 = vxpose.xlu1.b32.cont [5/16] (narrow) %v253_v57, 32  ;;  %949 = vst [vmem:[#allocation2 + $0xf0] sm:$0xff] %v679_v55  ;;  %v285_v57 = vld [vmem:[%s1967_s0 + $0x8a0] sm:$0xff] }
 0x1d6   :  { %763 = vxpose.xlu0.b32.cont [6/16] (narrow) %v238_v56, 32  ;;  %v270_v56 = vld [vmem:[%s1967_s0 + $0x828] sm:$0xff]  ;;  %v680_v59 = vpop.trf.xlu1 }
 0x1d7   :  { %795 = vxpose.xlu1.b32.cont [6/16] (narrow) %v254_v61, 32  ;;  %968 = vst [vmem:[#allocation2 + $0x188] sm:$0xff] %v680_v59  ;;  %v286_v61 = vld [vmem:[%s1967_s0 + $0x8a8] sm:$0xff] }
 0x1da   :  { %764 = vxpose.xlu0.b32.cont [7/16] (narrow) %v239_v60, 32  ;;  %v271_v60 = vld [vmem:[%s1967_s0 + $0x830] sm:$0xff]  ;;  %v681_v63 = vpop.trf.xlu1 }
 0x1db   :  { %796 = vxpose.xlu1.b32.cont [7/16] (narrow) %v255_v1, 32  ;;  %987 = vst [vmem:[#allocation2 + $0x220] sm:$0xff] %v681_v63  ;;  %v287_v1 = vld [vmem:[%s1967_s0 + $0x8b0] sm:$0xff] }
 0x1de   :  { %765 = vxpose.xlu0.b32.cont [8/16] (narrow) %v240_v0, 32  ;;  %v272_v0 = vld [vmem:[%s1967_s0 + $0x838] sm:$0xff] }
 0x1df   :  { %797 = vxpose.xlu1.b32.cont [8/16] (narrow) %v256_v5, 32  ;;  %v288_v5 = vld [vmem:[%s1967_s0 + $0x8b8] sm:$0xff] }
 0x1e2   :  { %766 = vxpose.xlu0.b32.cont [9/16] (narrow) %v241_v4, 32  ;;  %v273_v4 = vld [vmem:[%s1967_s0 + $0x840] sm:$0xff] }
 0x1e3   :  { %798 = vxpose.xlu1.b32.cont [9/16] (narrow) %v257_v9, 32 }
 0x1e6   :  { %767 = vxpose.xlu0.b32.cont [10/16] (narrow) %v242_v8, 32  ;;  %v289_v8 = vld [vmem:[%s1967_s0 + $0x8c0] sm:$0xff] }
 0x1e7   :  { %799 = vxpose.xlu1.b32.cont [10/16] (narrow) %v258_v13, 32  ;;  %v276_v13 = vld [vmem:[%s1967_s0 + $0x858] sm:$0xff] }
 0x1ea   :  { %768 = vxpose.xlu0.b32.cont [11/16] (narrow) %v243_v12, 32 }
 0x1eb   :  { %800 = vxpose.xlu1.b32.cont [11/16] (narrow) %v259_v17, 32  ;;  %v278_v17 = vld [vmem:[%s1967_s0 + $0x868] sm:$0xff] }
 0x1ee   :  { %769 = vxpose.xlu0.b32.cont [12/16] (narrow) %v244_v16, 32  ;;  %v292_v16 = vld [vmem:[%s1967_s0 + $0x8d8] sm:$0xff] }
 0x1ef   :  { %801 = vxpose.xlu1.b32.cont [12/16] (narrow) %v260_v21, 32  ;;  %v280_v21 = vld [vmem:[%s1967_s0 + $0x878] sm:$0xff] }
 0x1f2   :  { %770 = vxpose.xlu0.b32.cont [13/16] (narrow) %v245_v20, 32  ;;  %v294_v20 = vld [vmem:[%s1967_s0 + $0x8e8] sm:$0xff] }
 0x1f3   :  { %802 = vxpose.xlu1.b32.cont [13/16] (narrow) %v261_v25, 32 }
 0x1f6   :  { %771 = vxpose.xlu0.b32.cont [14/16] (narrow) %v246_v24, 32  ;;  %v296_v24 = vld [vmem:[%s1967_s0 + $0x8f8] sm:$0xff] }
 0x1f7   :  { %803 = vxpose.xlu1.b32.cont [14/16] (narrow) %v262_v29, 32 }
 0x1fa   :  { %772 = vxpose.xlu0.b32.cont [15/16] (narrow) %v247_v28, 32  ;;  %v299_v28 = vld [vmem:[%s1967_s0 + $0x910] sm:$0xff] }
 0x1fb   :  { %804 = vxpose.xlu1.b32.cont [15/16] (narrow) %v263_v33, 32 }
 0x1fe   :  { %773 = vxpose.xlu0.b32.end [16/16] (narrow) %v248_v32, 32 }
 0x1ff   :  { %805 = vxpose.xlu1.b32.end [16/16] (narrow) %v264_v37, 32 }
 0x202   :  { %822 = vxpose.xlu0.b32.start [1/16] (narrow) %v265_v36, 32  ;;  %v710_v54 = vpop.trf.xlu0  ;;  %v302_v36 = vld [vmem:[%s1967_s0 + $0x928] sm:$0xff] }
 0x203   :  { %854 = vxpose.xlu1.b32.start [1/16] (narrow) %v281_v41, 32  ;;  %930 = vst [vmem:[#allocation2 + $0x60] sm:$0xff] %v710_v54  ;;  %v742_v3 = vpop.trf.xlu1  ;;  %v306_v41 = vld [vmem:[%s1967_s0 + $0x948] sm:$0xff] }
 0x204   :  { %931 = vst [vmem:[#allocation2 + $0x68] sm:$0xff] %v742_v3 }
 0x206   :  { %823 = vxpose.xlu0.b32.cont [2/16] (narrow) %v266_v40, 32  ;;  %v711_v58 = vpop.trf.xlu0  ;;  %v305_v40 = vld [vmem:[%s1967_s0 + $0x940] sm:$0xff] }
 0x207   :  { %855 = vxpose.xlu1.b32.cont [2/16] (narrow) %v282_v45, 32  ;;  %950 = vst [vmem:[#allocation2 + $0xf8] sm:$0xff] %v711_v58  ;;  %v743_v6 = vpop.trf.xlu1 }
 0x208   :  { %951 = vst [vmem:[#allocation2 + $0x100] sm:$0xff] %v743_v6 }
 0x20a   :  { %824 = vxpose.xlu0.b32.cont [3/16] (narrow) %v267_v44, 32  ;;  %v712_v62 = vpop.trf.xlu0  ;;  %v309_v44 = vld [vmem:[%s1967_s0 + $0x960] sm:$0x1]  ;;  %s1039_s0 = smov [#allocation2]  }
 0x20b   :  { %856 = vxpose.xlu1.b32.cont [3/16] (narrow) %v283_v49, 32  ;;  %969 = vst [vmem:[#allocation2 + $0x190] sm:$0xff] %v712_v62  ;;  %v744_v9 = vpop.trf.xlu1  ;;  %s1000_s28 = sshll.u32 %s1039_s0, 4  ;;  %s1001_s28 = int_to_ptr.vmem [resolvable:$true] %s1000_s28 }
 0x20c   :  { %970 = vst [vmem:[#allocation2 + $0x198] sm:$0xff] %v744_v9  ;;  %s1015_s29 = scalar_lea.vmem %s1001_s28, 9728  ;;  %p1020_p1 = scmp.lt.s32.totalorder %s1001_s28, %s1001_s28 }
 0x20d   :  { %p1016_p0 = scmp.ne.s32.totalorder %s1001_s28, %s1015_s29  ;;  %p1021_p2 = scmp.lt.s32.totalorder %s1015_s29, %s1015_s29 }
 0x20e   :  { %825 = vxpose.xlu0.b32.cont [4/16] (narrow) %v268_v48, 32  ;;  %v713_v2 = vpop.trf.xlu0 }
 0x20f   :  { %857 = vxpose.xlu1.b32.cont [4/16] (narrow) %v284_v53, 32  ;;  %988 = vst [vmem:[#allocation2 + $0x228] sm:$0xff] %v713_v2  ;;  %v745_v12 = vpop.trf.xlu1  ;;  %p1022_p3 = por %p1021_p2, %p1020_p1 }
 0x210   :  { %989 = vst [vmem:[#allocation2 + $0x230] sm:$0xff] %v745_v12 }
 0x211   :  { %p1023_p4 = pnand %p1022_p3, %p1016_p0 }
 0x212   :  { %826 = vxpose.xlu0.b32.cont [5/16] (narrow) %v269_v52, 32 }
 0x213   :  { %858 = vxpose.xlu1.b32.cont [5/16] (narrow) %v285_v57, 32 }
 0x216   :  { %827 = vxpose.xlu0.b32.cont [6/16] (narrow) %v270_v56, 32 }
 0x217   :  { %859 = vxpose.xlu1.b32.cont [6/16] (narrow) %v286_v61, 32 }
 0x21a   :  { %828 = vxpose.xlu0.b32.cont [7/16] (narrow) %v271_v60, 32 }
 0x21b   :  { %860 = vxpose.xlu1.b32.cont [7/16] (narrow) %v287_v1, 32 }
 0x21e   :  { %829 = vxpose.xlu0.b32.cont [8/16] (narrow) %v272_v0, 32 }
 0x21f   :  { %861 = vxpose.xlu1.b32.cont [8/16] (narrow) %v288_v5, 32 }
 0x222   :  { %830 = vxpose.xlu0.b32.cont [9/16] (narrow) %v273_v4, 32 }
 0x223   :  { %862 = vxpose.xlu1.b32.cont [9/16] (narrow) %v289_v8, 32 }
 0x226   :  { %831 = vxpose.xlu0.b32.cont [10/16] (narrow) %v274_v7, 32 }
 0x227   :  { %863 = vxpose.xlu1.b32.cont [10/16] (narrow) %v290_v11, 32 }
 0x22a   :  { %832 = vxpose.xlu0.b32.cont [11/16] (narrow) %v275_v10, 32 }
 0x22b   :  { %864 = vxpose.xlu1.b32.cont [11/16] (narrow) %v291_v14, 32 }
 0x22e   :  { %833 = vxpose.xlu0.b32.cont [12/16] (narrow) %v276_v13, 32 }
 0x22f   :  { %865 = vxpose.xlu1.b32.cont [12/16] (narrow) %v292_v16, 32 }
 0x232   :  { %834 = vxpose.xlu0.b32.cont [13/16] (narrow) %v277_v15, 32 }
 0x233   :  { %866 = vxpose.xlu1.b32.cont [13/16] (narrow) %v293_v18, 32 }
 0x236   :  { %835 = vxpose.xlu0.b32.cont [14/16] (narrow) %v278_v17, 32 }
 0x237   :  { %867 = vxpose.xlu1.b32.cont [14/16] (narrow) %v294_v20, 32 }
 0x23a   :  { %836 = vxpose.xlu0.b32.cont [15/16] (narrow) %v279_v19, 32 }
 0x23b   :  { %868 = vxpose.xlu1.b32.cont [15/16] (narrow) %v295_v22, 32 }
 0x23e   :  { %837 = vxpose.xlu0.b32.end [16/16] (narrow) %v280_v21, 32 }
 0x23f   :  { %869 = vxpose.xlu1.b32.end [16/16] (narrow) %v296_v24, 32 }
 0x242   :  { %886 = vxpose.xlu0.b32.start [1/13] (short) (narrow) %v297_v23, 32  ;;  %v774_v25 = vpop.trf.xlu0 }
 0x243   :  { %932 = vst [vmem:[#allocation2 + $0x70] sm:$0xff] %v774_v25  ;;  %v806_v29 = vpop.trf.xlu1 }
 0x244   :  { %933 = vst [vmem:[#allocation2 + $0x78] sm:$0xff] %v806_v29 }
 0x246   :  { %887 = vxpose.xlu0.b32.cont [2/13] (short) (narrow) %v298_v26, 32  ;;  %v775_v27 = vpop.trf.xlu0 }
 0x247   :  { %952 = vst [vmem:[#allocation2 + $0x108] sm:$0xff] %v775_v27  ;;  %v807_v32 = vpop.trf.xlu1 }
 0x248   :  { %953 = vst [vmem:[#allocation2 + $0x110] sm:$0xff] %v807_v32 }
 0x24a   :  { %888 = vxpose.xlu0.b32.cont [3/13] (short) (narrow) %v299_v28, 32  ;;  %v776_v30 = vpop.trf.xlu0 }
 0x24b   :  { %971 = vst [vmem:[#allocation2 + $0x1a0] sm:$0xff] %v776_v30  ;;  %v808_v35 = vpop.trf.xlu1 }
 0x24c   :  { %972 = vst [vmem:[#allocation2 + $0x1a8] sm:$0xff] %v808_v35 }
 0x24e   :  { %889 = vxpose.xlu0.b32.cont [4/13] (short) (narrow) %v300_v31, 32  ;;  %v777_v33 = vpop.trf.xlu0 }
 0x24f   :  { %990 = vst [vmem:[#allocation2 + $0x238] sm:$0xff] %v777_v33  ;;  %v809_v37 = vpop.trf.xlu1 }
 0x250   :  { %991 = vst [vmem:[#allocation2 + $0x240] sm:$0xff] %v809_v37 }
 0x252   :  { %890 = vxpose.xlu0.b32.cont [5/13] (short) (narrow) %v301_v34, 32 }
 0x256   :  { %891 = vxpose.xlu0.b32.cont [6/13] (short) (narrow) %v302_v36, 32 }
 0x25a   :  { %892 = vxpose.xlu0.b32.cont [7/13] (short) (narrow) %v303_v38, 32 }
 0x25e   :  { %893 = vxpose.xlu0.b32.cont [8/13] (short) (narrow) %v304_v39, 32 }
 0x262   :  { %894 = vxpose.xlu0.b32.cont [9/13] (short) (narrow) %v305_v40, 32 }
 0x266   :  { %895 = vxpose.xlu0.b32.cont [10/13] (short) (narrow) %v306_v41, 32 }
 0x26a   :  { %896 = vxpose.xlu0.b32.cont [11/13] (short) (narrow) %v307_v42, 32 }
 0x26e   :  { %897 = vxpose.xlu0.b32.cont [12/13] (short) (narrow) %v308_v43, 32 }
 0x272   :  { %898 = vxpose.xlu0.b32.end [13/13] (short) (narrow) %v309_v44, 32 }
 0x282   :  { %v838_v45 = vpop.trf.xlu0 }
 0x283   :  { %934 = vst [vmem:[#allocation2 + $0x80] sm:$0xff] %v838_v45  ;;  %v870_v47 = vpop.trf.xlu1 }
 0x284   :  { %935 = vst [vmem:[#allocation2 + $0x88] sm:$0xff] %v870_v47 }
 0x286   :  { %v839_v46 = vpop.trf.xlu0 }
 0x287   :  { %954 = vst [vmem:[#allocation2 + $0x118] sm:$0xff] %v839_v46  ;;  %v871_v49 = vpop.trf.xlu1 }
 0x288   :  { %955 = vst [vmem:[#allocation2 + $0x120] sm:$0xff] %v871_v49 }
 0x28a   :  { %v840_v48 = vpop.trf.xlu0 }
 0x28b   :  { %973 = vst [vmem:[#allocation2 + $0x1b0] sm:$0xff] %v840_v48  ;;  %v872_v51 = vpop.trf.xlu1 }
 0x28c   :  { %974 = vst [vmem:[#allocation2 + $0x1b8] sm:$0xff] %v872_v51 }
 0x28e   :  { %v841_v50 = vpop.trf.xlu0 }
 0x28f   :  { %992 = vst [vmem:[#allocation2 + $0x248] sm:$0xff] %v841_v50  ;;  %v873_v52 = vpop.trf.xlu1 }
 0x290   :  { %993 = vst [vmem:[#allocation2 + $0x250] sm:$0xff] %v873_v52 }
 0x2c2   :  { %v902_v53 = vpop.trf.xlu0 }
 0x2c3   :  { %937 = vst.msk [vmem:[#allocation2 + $0x90] sm:$0xff] %vm936_vm0, %v902_v53 }
 0x2c6   :  { %v903_v54 = vpop.trf.xlu0 }
 0x2c7   :  { %956 = vst.msk [vmem:[#allocation2 + $0x128] sm:$0xff] %vm936_vm0, %v903_v54 }
 0x2ca   :  { %v904_v55 = vpop.trf.xlu0 }
 0x2cb   :  { %975 = vst.msk [vmem:[#allocation2 + $0x1c0] sm:$0xff] %vm936_vm0, %v904_v55 }
 0x2ce   :  { %v905_v56 = vpop.trf.xlu0 }
 0x2cf   :  { %994 = vst.msk [vmem:[#allocation2 + $0x258] sm:$0xff] %vm936_vm0, %v905_v56 }
 0x2d0   :  { %1026 = shalt.err (!%p1023_p4)
}
 0x2d1   :  { %s1027_s3 = scalar_lea.hbm %s1968_s1, 9728 }
 0x2d2   :  { %p1028_p5 = scmp.ne.s32.totalorder %s1968_s1, %s1027_s3  ;;  %p1031_p6 = scmp.lt.u32.totalorder %s1027_s3, %s1968_s1 }
 0x2d4   :  { %p1033_p7 = pnand %p1031_p6, %p1028_p5 }
 0x2d6   :  { %1036 = shalt.err (!%p1033_p7)
}
 0x2d7   :  { %s1040_s8 = smov 2432   ;;  %s1041_s9 = smov 152  }
 0x2d8   :  { %1006 = dma.vmem_to_hbm [thread:$0]  %s1001_s28, 9728, %s1968_s1, [#allocation3], %s1040_s8, %s1040_s8, %s1041_s9  }
 0x2d9   :  { %1037 = dma.done.wait [#allocation3], 9728  }
 0x2da   :  { %1038 = vsyncadd [#allocation3], 4294957568 }
 0x2db   :  { %1010 = vsyncpa [#allocation3], 1 }

</bundles_post_ra>
